<compile_context>
chip_gen: v5e
topology: v5e:2x2
jax: 0.10.0
libtpu: 0.0.40
codegen_flags: <defaults>
</compile_context>

<pallas_src>
import functools
import math

import jax
import jax.numpy as jnp
from jax import lax
from jax.experimental import pallas as pl
from jax.experimental.pallas import tpu as pltpu

_EPS = 1e-8                 # torch.nn.CosineSimilarity default eps
_LANES = 128
_SUBLANES = 8
_MiB = 1024 * 1024
_TEMP_VREG_FACTOR = 15      # conservative count of live (ts,128) f32 temporaries


def _round_up(a, b):
    return -(-a // b) * b


def _round_down(a, b):
    return (a // b) * b


@functools.lru_cache(maxsize=None)
def _tpu_vmem_and_cores():
    """(per-core VMEM bytes, TensorCores per chip) with conservative fallbacks."""
    vmem = 64 * _MiB          # conservative default (v7x-class)
    cores = 1
    try:
        info = pltpu.get_tpu_info()
        vmem = int(getattr(info, "vmem_capacity_bytes", vmem))
    except Exception:
        pass
    try:
        kind = jax.devices()[0].device_kind.lower()
        if "v7" in kind:      # v7x: 2 TensorCores per chip
            cores = 2
    except Exception:
        pass
    return vmem, cores


def _simloss_kernel(x_ref, y_ref, out_ref, dot_ref, nxx_ref, nyy_ref, *,
                    n_true, ts, d_total, d_blk, num_kd, k_steps, unroll):
    """Grid step (p, k, kd): one (d_blk, ts, 128) block of both inputs.

    Accumulates a dense (8, 128) partial sum of sqrt(2*(1-cos)) into the
    per-p resident output block; the wrapper sums partials and divides by N.
    """
    p = pl.program_id(0)
    k = pl.program_id(1)
    kd = pl.program_id(2)

    # Zero the (per-p) resident output accumulator on its first visit.
    @pl.when((k == 0) & (kd == 0))
    def _():
        out_ref[...] = jnp.zeros_like(out_ref)

    # ---- partial reductions over this block's d rows ------------------------
    # Loop over d one (ts,128) slab at a time so the live f32 working set is
    # O(ts*128) instead of O(d*ts*128) (perf review: VMEM temporaries).
    def body(i, carry):
        acc_dot, acc_xx, acc_yy = carry
        xi = x_ref[i].astype(jnp.float32)          # (ts, 128), dense vregs
        yi = y_ref[i].astype(jnp.float32)
        return (acc_dot + xi * yi, acc_xx + xi * xi, acc_yy + yi * yi)

    z = jnp.zeros((ts, _LANES), jnp.float32)
    if num_kd == 1:
        # Whole reduction dim in one block: static trip count, short loop unrolled.
        acc_dot, acc_xx, acc_yy = lax.fori_loop(0, d_total, body, (z, z, z),
                                                unroll=unroll)
    else:
        @pl.when(kd == 0)
        def _():
            dot_ref[...] = jnp.zeros_like(dot_ref)
            nxx_ref[...] = jnp.zeros_like(nxx_ref)
            nyy_ref[...] = jnp.zeros_like(nyy_ref)

        # Last d block may be ragged; only touch its valid rows.
        d_hi = jnp.minimum(d_blk, d_total - kd * d_blk)
        acc_dot, acc_xx, acc_yy = lax.fori_loop(0, d_hi, body, (z, z, z))
        dot_ref[...] += acc_dot
        nxx_ref[...] += acc_xx
        nyy_ref[...] += acc_yy

    # ---- finalize once the d sweep for this column block is complete --------
    def finalize():
        if num_kd == 1:
            dot, nxx, nyy = acc_dot, acc_xx, acc_yy
        else:
            dot, nxx, nyy = dot_ref[...], nxx_ref[...], nyy_ref[...]

        # torch clamps the *product* of squared norms at eps^2; keep exactly
        # that (also reproduces torch's f32 overflow behaviour for huge norms).
        cos = dot * lax.rsqrt(jnp.maximum(nxx * nyy, _EPS * _EPS))
        # Clamp at 0 so rounding cos slightly above 1 gives 0, not NaN.
        val = jnp.sqrt(jnp.maximum(2.0 * (1.0 - cos), 0.0))   # (ts, 128)

        def fold(v):   # (ts, 128) -> (8, 128) with plain vreg adds
            return v.reshape(ts // _SUBLANES, _SUBLANES, _LANES).sum(axis=0)

        # Tail masking only on the boundary block (interior blocks skip the
        # iota/compare/select work entirely).
        col0 = (p * k_steps + k) * (ts * _LANES)
        needs_mask = col0 + ts * _LANES > n_true
        # TODO(synk): col0/n_true are int32; flattened N >= 2^31 would need
        # 64-bit (or fully block-relative) masking arithmetic.

        @pl.when(jnp.logical_not(needs_mask))
        def _():
            out_ref[...] += fold(val)

        @pl.when(needs_mask)
        def _():
            rel = (lax.broadcasted_iota(jnp.int32, (ts, _LANES), 0) * _LANES
                   + lax.broadcasted_iota(jnp.int32, (ts, _LANES), 1))
            out_ref[...] += fold(jnp.where(rel < n_true - col0, val, 0.0))

    if num_kd == 1:
        finalize()
    else:
        pl.when(kd == num_kd - 1)(finalize)


def sim_loss_sqrt(x, y, dim=0, *, max_ts=2048):
    """Pallas TPU implementation of SIMLoss_sqrt.forward(input, target)."""
    assert x.shape == y.shape, "input and target must have the same shape"

    # TODO(synk): for dim != 0 this moveaxis is an HBM transpose; a lane-axis
    # reduction kernel variant would avoid it.  dim=0 (the module default) is
    # transpose-free.
    x2 = jnp.moveaxis(x, dim, 0)
    y2 = jnp.moveaxis(y, dim, 0)
    d = int(x2.shape[0])
    n = int(math.prod(x2.shape[1:])) if x2.ndim > 1 else 1
    x2 = x2.reshape(d, n)
    y2 = y2.reshape(d, n)

    itemsize = jnp.dtype(x2.dtype).itemsize
    pack = max(_SUBLANES, 32 // max(1, itemsize))   # 8 f32 / 16 bf16 / 32 int8

    # Dense-lane layout (d, nb, 128): every loaded vreg is full even for tiny d.
    # Only pad the <128-column tail (and tiny inputs up to one packed sublane
    # tile); the full block-grid pad of v2 is gone — the column grid is ragged
    # and the boundary block is masked in-kernel instead.
    nb = int(pl.cdiv(n, _LANES))
    nb_arr = max(nb, pack)
    n_arr = nb_arr * _LANES
    if n_arr != n:
        x2 = jnp.pad(x2, ((0, 0), (0, n_arr - n)))
        y2 = jnp.pad(y2, ((0, 0), (0, n_arr - n)))
    x3 = x2.reshape(d, nb_arr, _LANES)
    y3 = y2.reshape(d, nb_arr, _LANES)

    # --- generation-aware VMEM budgets ---------------------------------------
    phys_vmem, num_tc = _tpu_vmem_and_cores()
    if phys_vmem >= 100 * _MiB:          # v5e / v6e class (128 MiB VMEM)
        vmem_limit = 96 * _MiB
        step_budget = 56 * _MiB          # input pipeline buffers + f32 temps
    else:                                # v7x class (64 MiB per TC) / unknown
        vmem_limit = 44 * _MiB
        step_budget = 24 * _MiB

    def temp_bytes(t):                   # in-kernel f32 temporaries + scratch
        return _TEMP_VREG_FACTOR * t * _LANES * 4

    def per_d_bytes(t):                  # 2 inputs x 2 pipeline buffers, 1 d row
        return 4 * t * _LANES * itemsize

    # Tile rows (of 128 lanes): as large as the budget allows, multiple of the
    # packed-sublane tile, never exceeding the array extent.
    ts = max(pack, min(max_ts, _round_down(nb_arr, pack)))
    while ts > pack and temp_bytes(ts) + per_d_bytes(ts) > step_budget:
        ts = max(pack, _round_down(ts // 2, pack))

    # d rows per block; if the whole reduction dim does not fit, a third
    # (innermost, arbitrary) grid axis sweeps it via scratch accumulators.
    d_blk = int(max(1, min(d, (step_budget - temp_bytes(ts)) // per_d_bytes(ts))))
    num_kd = int(pl.cdiv(d, d_blk))

    kb = int(pl.cdiv(nb_arr, ts))        # column blocks (last may be ragged)
    # Megacore: split columns across both TensorCores only on 2-TC chips and
    # only when they split evenly (no fully out-of-range blocks).
    p_axis = 2 if (num_tc >= 2 and kb >= 2 and kb % 2 == 0) else 1
    k_steps = kb // p_axis

    unroll = int(min(8, max(1, d))) if num_kd == 1 else 1

    kernel = functools.partial(
        _simloss_kernel, n_true=n, ts=ts, d_total=d, d_blk=d_blk,
        num_kd=num_kd, k_steps=k_steps, unroll=unroll)

    def in_map(p, k, kd):
        return (kd, p * k_steps + k, 0)

    block = (d_blk, ts, _LANES)
    # Tiny blocks with many grid steps: triple-buffer the inputs so DMA issue
    # latency between short steps stays hidden.
    deep = (d_blk * ts * _LANES * itemsize <= 256 * 1024
            and p_axis * k_steps * num_kd >= 8)
    try:
        in_spec = (pl.BlockSpec(block, in_map, pipeline_mode=pl.Buffered(3))
                   if deep else pl.BlockSpec(block, in_map))
    except TypeError:      # pipeline_mode unavailable -> default double buffering
        in_spec = pl.BlockSpec(block, in_map)

    scratch_rows = ts if num_kd > 1 else _SUBLANES   # scratch unused if num_kd==1

    cost = pl.CostEstimate(
        flops=int(6 * d * n + 10 * n),
        transcendentals=int(2 * n),
        bytes_accessed=int(2 * d * nb_arr * _LANES * itemsize
                           + p_axis * _SUBLANES * _LANES * 4),
    )

    partials = pl.pallas_call(
        kernel,
        out_shape=jax.ShapeDtypeStruct((p_axis * _SUBLANES, _LANES), jnp.float32),
        grid=(p_axis, k_steps, num_kd),
        in_specs=[in_spec, in_spec],
        out_specs=pl.BlockSpec((_SUBLANES, _LANES), lambda p, k, kd: (p, 0)),
        scratch_shapes=[pltpu.VMEM((scratch_rows, _LANES), jnp.float32)
                        for _ in range(3)],
        compiler_params=pltpu.CompilerParams(
            dimension_semantics=("parallel", "arbitrary", "arbitrary"),
            vmem_limit_bytes=vmem_limit,
        ),
        cost_estimate=cost,
    )(x3, y3)

    return jnp.sum(partials) / n


def _reference(x, y, dim=0):
    """Pure-JAX reference mirroring torch CosineSimilarity (product-clamped eps)."""
    dot = jnp.sum(x * y, axis=dim)
    nxx = jnp.sum(x * x, axis=dim)
    nyy = jnp.sum(y * y, axis=dim)
    cos = dot / jnp.sqrt(jnp.maximum(nxx * nyy, _EPS * _EPS))
    return jnp.mean(jnp.sqrt(jnp.maximum(2.0 * (1.0 - cos), 0.0)))


if __name__ == "__main__":
    loss_fn = jax.jit(sim_loss_sqrt, static_argnames=("dim",))

    key = jax.random.PRNGKey(0)
    kx, ky = jax.random.split(key)
    # NCHW-style inputs; CosineSimilarity reduces over dim=0 (module default).
    x = jax.random.normal(kx, (2, 4, 16, 16), dtype=jnp.float32)
    y = jax.random.normal(ky, (2, 4, 16, 16), dtype=jnp.float32)
    loss = jax.block_until_ready(loss_fn(x, y, dim=0))
    ref = _reference(x, y, dim=0)
    assert jnp.allclose(loss, ref, rtol=1e-4, atol=1e-5), (loss, ref)

    # Ragged flattened N (not a multiple of 128) exercises the in-kernel tail mask.
    kx2, ky2 = jax.random.split(jax.random.PRNGKey(1))
    x2 = jax.random.normal(kx2, (3, 5, 7, 11), dtype=jnp.float32)
    y2 = jax.random.normal(ky2, (3, 5, 7, 11), dtype=jnp.float32)
    loss2 = jax.block_until_ready(loss_fn(x2, y2, dim=0))
    ref2 = _reference(x2, y2, dim=0)
    assert jnp.allclose(loss2, ref2, rtol=1e-4, atol=1e-5), (loss2, ref2)

    print("KERNEL_OK")
</pallas_src>

<mosaic_0001>
module attributes {stable_mosaic.version = 11 : i64} {
  func.func @_simloss_kernel(%arg0: i32, %arg1: i32, %arg2: i32, %arg3: memref<2x8x128xf32, #tpu.memory_space<vmem>>, %arg4: memref<2x8x128xf32, #tpu.memory_space<vmem>>, %arg5: memref<8x128xf32, #tpu.memory_space<vmem>>, %arg6: memref<8x128xf32, #tpu.memory_space<vmem>>, %arg7: memref<8x128xf32, #tpu.memory_space<vmem>>, %arg8: memref<8x128xf32, #tpu.memory_space<vmem>>) attributes {dimension_semantics = [#tpu.dimension_semantics<parallel>, #tpu.dimension_semantics<arbitrary>, #tpu.dimension_semantics<arbitrary>], iteration_bounds = array<i64: 1, 1, 1>, scalar_prefetch = 0 : i64, scratch_operands = 3 : i64, tpu.core_type = #tpu.core_type<tc>, window_params = [{transform_indices = @transform_0, window_bounds = array<i64: 2, 8, 128>}, {transform_indices = @transform_1, window_bounds = array<i64: 2, 8, 128>}, {transform_indices = @transform_2, window_bounds = array<i64: 8, 128>}]} {
    %c0_i32 = arith.constant 0 : i32
    %0 = arith.cmpi eq, %arg1, %c0_i32 : i32
    %c0_i32_0 = arith.constant 0 : i32
    %1 = arith.cmpi eq, %arg2, %c0_i32_0 : i32
    %2 = arith.andi %0, %1 : i1
    %3 = arith.extui %2 : i1 to i32
    %c0_i32_1 = arith.constant 0 : i32
    %4 = arith.cmpi ne, %3, %c0_i32_1 : i32
    scf.if %4 {
      %cst_19 = arith.constant 0.000000e+00 : f32
      %52 = vector.broadcast %cst_19 : f32 to vector<8x128xf32>
      %c0_20 = arith.constant 0 : index
      %c0_21 = arith.constant 0 : index
      %53 = vector.load %arg5[%c0_20, %c0_21] : memref<8x128xf32, #tpu.memory_space<vmem>>, vector<8x128xf32>
      tpu.vector_store %arg5[%c0_20, %c0_21], %52 {strides = array<i32>} : memref<8x128xf32, #tpu.memory_space<vmem>>, vector<8x128xf32>,
    } else {
    }
    %cst = arith.constant 0.000000e+00 : f32
    %5 = vector.broadcast %cst : f32 to vector<8x128xf32>
    %c0_i32_2 = arith.constant 0 : i32
    %6 = arith.index_cast %c0_i32_2 : i32 to index
    %c0 = arith.constant 0 : index
    %c0_3 = arith.constant 0 : index
    %7 = vector.load %arg3[%6, %c0, %c0_3] : memref<2x8x128xf32, #tpu.memory_space<vmem>>, vector<1x8x128xf32>
    %8 = vector.shape_cast %7 : vector<1x8x128xf32> to vector<8x128xf32>
    %9 = arith.index_cast %c0_i32_2 : i32 to index
    %c0_4 = arith.constant 0 : index
    %c0_5 = arith.constant 0 : index
    %10 = vector.load %arg4[%9, %c0_4, %c0_5] : memref<2x8x128xf32, #tpu.memory_space<vmem>>, vector<1x8x128xf32>
    %11 = vector.shape_cast %10 : vector<1x8x128xf32> to vector<8x128xf32>
    %12 = arith.mulf %8, %11 : vector<8x128xf32>
    %13 = arith.addf %5, %12 : vector<8x128xf32>
    %14 = arith.mulf %8, %8 : vector<8x128xf32>
    %15 = arith.addf %5, %14 : vector<8x128xf32>
    %16 = arith.mulf %11, %11 : vector<8x128xf32>
    %17 = arith.addf %5, %16 : vector<8x128xf32>
    %c1_i32 = arith.constant 1 : i32
    %18 = arith.index_cast %c1_i32 : i32 to index
    %c0_6 = arith.constant 0 : index
    %c0_7 = arith.constant 0 : index
    %19 = vector.load %arg3[%18, %c0_6, %c0_7] : memref<2x8x128xf32, #tpu.memory_space<vmem>>, vector<1x8x128xf32>
    %20 = vector.shape_cast %19 : vector<1x8x128xf32> to vector<8x128xf32>
    %21 = arith.index_cast %c1_i32 : i32 to index
    %c0_8 = arith.constant 0 : index
    %c0_9 = arith.constant 0 : index
    %22 = vector.load %arg4[%21, %c0_8, %c0_9] : memref<2x8x128xf32, #tpu.memory_space<vmem>>, vector<1x8x128xf32>
    %23 = vector.shape_cast %22 : vector<1x8x128xf32> to vector<8x128xf32>
    %24 = arith.mulf %20, %23 : vector<8x128xf32>
    %25 = arith.addf %13, %24 : vector<8x128xf32>
    %26 = arith.mulf %20, %20 : vector<8x128xf32>
    %27 = arith.addf %15, %26 : vector<8x128xf32>
    %28 = arith.mulf %23, %23 : vector<8x128xf32>
    %29 = arith.addf %17, %28 : vector<8x128xf32>
    %c2_i32 = arith.constant 2 : i32
    %30 = arith.mulf %27, %29 : vector<8x128xf32>
    %cst_10 = arith.constant 1.000000e-16 : f32
    %31 = vector.broadcast %cst_10 : f32 to vector<8x128xf32>
    %32 = arith.maximumf %30, %31 : vector<8x128xf32>
    %33 = math.rsqrt %32 : vector<8x128xf32>
    %34 = arith.mulf %25, %33 : vector<8x128xf32>
    %cst_11 = arith.constant 1.000000e+00 : f32
    %35 = vector.broadcast %cst_11 : f32 to vector<8x128xf32>
    %36 = arith.subf %35, %34 : vector<8x128xf32>
    %cst_12 = arith.constant 2.000000e+00 : f32
    %37 = vector.broadcast %cst_12 : f32 to vector<8x128xf32>
    %38 = arith.mulf %37, %36 : vector<8x128xf32>
    %cst_13 = arith.constant 0.000000e+00 : f32
    %39 = vector.broadcast %cst_13 : f32 to vector<8x128xf32>
    %40 = arith.maximumf %38, %39 : vector<8x128xf32>
    %41 = math.sqrt %40 : vector<8x128xf32>
    %c1_i32_14 = arith.constant 1 : i32
    %42 = arith.muli %arg0, %c1_i32_14 : i32
    %43 = arith.addi %42, %arg1 : i32
    %c1024_i32 = arith.constant 1024 : i32
    %44 = arith.muli %43, %c1024_i32 : i32
    %c1024_i32_15 = arith.constant 1024 : i32
    %45 = arith.addi %44, %c1024_i32_15 : i32
    %c1024_i32_16 = arith.constant 1024 : i32
    %46 = arith.cmpi sgt, %45, %c1024_i32_16 : i32
    %true = arith.constant true
    %47 = arith.xori %46, %true : i1
    %48 = arith.extui %47 : i1 to i32
    %c0_i32_17 = arith.constant 0 : i32
    %49 = arith.cmpi ne, %48, %c0_i32_17 : i32
    scf.if %49 {
      %c0_19 = arith.constant 0 : index
      %c0_20 = arith.constant 0 : index
      %52 = vector.load %arg5[%c0_19, %c0_20] : memref<8x128xf32, #tpu.memory_space<vmem>>, vector<8x128xf32>
      %53 = vector.shape_cast %41 : vector<8x128xf32> to vector<1x8x128xf32>
      %cst_21 = arith.constant dense<0.000000e+00> : vector<8x128xf32>
      %54 = vector.multi_reduction <add>, %53, %cst_21 [0] : vector<1x8x128xf32> to vector<8x128xf32>
      %55 = arith.addf %52, %54 : vector<8x128xf32>
      %c0_22 = arith.constant 0 : index
      %c0_23 = arith.constant 0 : index
      %56 = vector.load %arg5[%c0_22, %c0_23] : memref<8x128xf32, #tpu.memory_space<vmem>>, vector<8x128xf32>
      tpu.vector_store %arg5[%c0_22, %c0_23], %55 {strides = array<i32>} : memref<8x128xf32, #tpu.memory_space<vmem>>, vector<8x128xf32>,
    } else {
    }
    %50 = arith.extui %46 : i1 to i32
    %c0_i32_18 = arith.constant 0 : i32
    %51 = arith.cmpi ne, %50, %c0_i32_18 : i32
    scf.if %51 {
      %52 = tpu.iota {dimensions = array<i32: 0>} : vector<8x128xi32>
      %c128_i32 = arith.constant 128 : i32
      %53 = vector.broadcast %c128_i32 : i32 to vector<8x128xi32>
      %54 = arith.muli %52, %53 : vector<8x128xi32>
      %55 = tpu.iota {dimensions = array<i32: 1>} : vector<8x128xi32>
      %56 = arith.addi %54, %55 : vector<8x128xi32>
      %c0_19 = arith.constant 0 : index
      %c0_20 = arith.constant 0 : index
      %57 = vector.load %arg5[%c0_19, %c0_20] : memref<8x128xf32, #tpu.memory_space<vmem>>, vector<8x128xf32>
      %c1024_i32_21 = arith.constant 1024 : i32
      %58 = arith.subi %c1024_i32_21, %44 : i32
      %59 = vector.broadcast %58 : i32 to vector<8x128xi32>
      %60 = arith.cmpi slt, %56, %59 : vector<8x128xi32>
      %cst_22 = arith.constant 0.000000e+00 : f32
      %61 = vector.broadcast %cst_22 : f32 to vector<8x128xf32>
      %62 = arith.select %60, %41, %61 : vector<8x128xi1>, vector<8x128xf32>
      %63 = vector.shape_cast %62 : vector<8x128xf32> to vector<1x8x128xf32>
      %cst_23 = arith.constant dense<0.000000e+00> : vector<8x128xf32>
      %64 = vector.multi_reduction <add>, %63, %cst_23 [0] : vector<1x8x128xf32> to vector<8x128xf32>
      %65 = arith.addf %57, %64 : vector<8x128xf32>
      %c0_24 = arith.constant 0 : index
      %c0_25 = arith.constant 0 : index
      %66 = vector.load %arg5[%c0_24, %c0_25] : memref<8x128xf32, #tpu.memory_space<vmem>>, vector<8x128xf32>
      tpu.vector_store %arg5[%c0_24, %c0_25], %65 {strides = array<i32>} : memref<8x128xf32, #tpu.memory_space<vmem>>, vector<8x128xf32>,
    } else {
    }
    return
  }
  func.func @transform_0(%arg0: i32, %arg1: i32, %arg2: i32) -> (i32, i32, i32) {
    %c1_i32 = arith.constant 1 : i32
    %0 = arith.muli %arg0, %c1_i32 : i32
    %1 = arith.addi %0, %arg1 : i32
    %c0_i32 = arith.constant 0 : i32
    %c0_i32_0 = arith.constant 0 : i32
    return %arg2, %1, %c0_i32 : i32, i32, i32
  }
  func.func @transform_1(%arg0: i32, %arg1: i32, %arg2: i32) -> (i32, i32, i32) {
    %c1_i32 = arith.constant 1 : i32
    %0 = arith.muli %arg0, %c1_i32 : i32
    %1 = arith.addi %0, %arg1 : i32
    %c0_i32 = arith.constant 0 : i32
    %c0_i32_0 = arith.constant 0 : i32
    return %arg2, %1, %c0_i32 : i32, i32, i32
  }
  func.func @transform_2(%arg0: i32, %arg1: i32, %arg2: i32) -> (i32, i32) {
    %c0_i32 = arith.constant 0 : i32
    %c0_i32_0 = arith.constant 0 : i32
    return %arg0, %c0_i32 : i32, i32
  }
}

</mosaic_0001>

<bundles_post_ra>
// kernel: sim_loss_sqrt.1
= control target key start
LH: loop header
LB: loop body
LE: loop exit
PB: predicated region body
PF: predicated region fallthrough
CT: control target
= control target key end

     0   :  { %s180_s0 = inlined_call_operand.vmem [shape: f32[2,8,128], index: 0, kind: input, shape index: {}]   ;;  %s181_s1 = inlined_call_operand.vmem [shape: f32[2,8,128], index: 1, kind: input, shape index: {}]   ;;  %s182_s2 = inlined_call_operand.vmem [shape: f32[8,128], index: 2, kind: output, shape index: {}]  }
   0x1   :  { %v52_v0 = vld [vmem:[%s180_s0] sm:$0xff]  ;;  %v143_v2 = vld [vmem:[%s180_s0 + $0x8] sm:$0xff] }
   0x2   :  { %v53_v1 = vld [vmem:[%s181_s1] sm:$0xff]  ;;  %v56_v3 = vmul.f32 %v52_v0, %v52_v0  ;;  %v144_v5 = vld [vmem:[%s181_s1 + $0x8] sm:$0xff]  ;;  %v66_v6 = vmul.f32 %v143_v2, %v143_v2 }
   0x3   :  { %v58_v4 = vmul.f32 %v53_v1, %v53_v1  ;;  %v68_v7 = vmul.f32 %v144_v5, %v144_v5  ;;  %v54_v15 = vmul.f32 %v53_v1, %v52_v0  ;;  %v64_v16 = vmul.f32 %v144_v5, %v143_v2 }
   0x4   :  { %v67_v8 = vadd.f32 %v66_v6, %v56_v3 }
   0x5   :  { %v69_v9 = vadd.f32 %v68_v7, %v58_v4  ;;  %v65_v19 = vadd.f32 %v64_v16, %v54_v15 }
   0x7   :  { %v70_v10 = vmul.f32 %v69_v9, %v67_v8 }
   0x9   :  { %v71_v11 = vmax.f32 %v70_v10, 1e-16 }
   0xb   :  { %146 = vrsqrt.f32 %v71_v11  ;;  %vm78_vm0 = vweird.f32 %v71_v11 }
  0x11   :  { %v147_v12 = vpop.eup %146 }
  0x12   :  { %v73_v13 = vmul.f32 %v147_v12, %v71_v11  ;;  %vm79_vm1 = vweird.f32 %v147_v12 }
  0x13   :  { %vm80_vm2 = vmor %vm78_vm0, %vm79_vm1 }
  0x14   :  { %v74_v14 = vmul.f32 %v147_v12, %v73_v13 }
  0x16   :  { %v75_v17 = vmul.f32 0.5, %v74_v14 }
  0x18   :  { %v76_v18 = vsub.f32 1.5, %v75_v17 }
  0x1a   :  { %v77_v20 = vmul.f32 %v147_v12, %v76_v18 }
  0x1c   :  { %v81_v21 = vsel %vm80_vm2, %v147_v12, %v77_v20 }
  0x1d   :  { %v82_v22 = vmul.f32 %v81_v21, %v65_v19 }
  0x1f   :  { %v83_v23 = vsub.f32 1.0, %v82_v22 }
  0x21   :  { %v84_v24 = vmul.f32 2.0, %v83_v23 }
  0x23   :  { %v85_v25 = vmax.f32 %v84_v24, 0.0 }
  0x25   :  { %148 = vrsqrt.f32 %v85_v25  ;;  %vm93_vm3 = vcmp.eq.f32.partialorder %v85_v25, inf  ;;  %v96_v32 = vand.u32 2147483648, %v85_v25  ;;  %vm95_vm4 = vcmp.eq.f32.partialorder %v85_v25, 0.0 }
  0x2b   :  { %v149_v26 = vpop.eup %148 }
  0x2c   :  { %v87_v27 = vmul.f32 %v149_v26, %v85_v25 }
  0x2e   :  { %v88_v28 = vmul.f32 %v149_v26, %v87_v27 }
  0x30   :  { %v89_v29 = vmul.f32 0.5, %v88_v28 }
  0x32   :  { %v90_v30 = vsub.f32 1.5, %v89_v29 }
  0x34   :  { %v91_v31 = vmul.f32 %v149_v26, %v90_v30 }
  0x36   :  { %v92_v33 = vmul.f32 %v91_v31, %v85_v25 }
  0x38   :  { %v94_v34 = vsel %vm93_vm3, %v85_v25, %v92_v33 }
  0x39   :  { %v97_v35 = vsel %vm95_vm4, %v96_v32, %v94_v34 }
  0x3a   :  { %109 = vst [vmem:[%s182_s2] sm:$0xff] %v97_v35 }

</bundles_post_ra>
